<compile_context>
chip_gen: v7x
topology: tpu7x:2x2x1
jax: 0.10.0
libtpu: 0.0.40
codegen_flags: <defaults>
</compile_context>

<pallas_src>
import jax
import jax.numpy as jnp
from jax import lax
from jax.experimental import pallas as pl
from jax.experimental.pallas import tpu as pltpu


def _intervention_kernel(base_ref, src_ref, w_ref, out_ref):
    """out = base + (source - base) @ W @ W.T  (two MXU matmuls, no explicit W.T)."""
    base = base_ref[...]                       # [TM, E]  input dtype (no up-cast)
    diff = src_ref[...] - base                 # VPU sub in input dtype
    w = w_ref[...]                             # [E, R]   input dtype
    # Low-rank projection (MXU, f32 accumulation).
    r = jnp.dot(diff, w, preferred_element_type=jnp.float32)          # [TM, R]
    # Back-projection: contract r's last axis with W's last axis so W is
    # consumed as stored (no XLU transpose / W.T materialization per step).
    back = lax.dot_general(
        r.astype(w.dtype), w,
        dimension_numbers=(((1,), (1,)), ((), ())),
        preferred_element_type=jnp.float32)                           # [TM, E]
    out_ref[...] = (base + back.astype(base.dtype)).astype(out_ref.dtype)


def low_rank_rotated_space_intervention(base, source, rotate_weight, *,
                                        tile_m=None,
                                        vmem_limit_bytes=48 * 1024 * 1024):
    """Pallas wrapper. base/source: [..., E]; rotate_weight: [E, R] orthonormal cols."""
    assert base.shape == source.shape
    orig_shape = base.shape
    E = orig_shape[-1]
    R = rotate_weight.shape[-1]
    assert rotate_weight.shape[0] == E

    out_dtype = base.dtype
    dtype_bytes = jnp.dtype(out_dtype).itemsize
    # Sublane granularity for the second-to-last dim of each block.
    sub = 8 if dtype_bytes >= 4 else (16 if dtype_bytes == 2 else 32)

    base2d = base.reshape(-1, E)
    src2d = source.reshape(-1, E)
    N = base2d.shape[0]

    # Keep MXU operands homogeneous with the activations (bf16 stays bf16).
    w = rotate_weight.astype(out_dtype)

    # Lane-dense padding: block last dims must be multiples of 128.
    # Zero rows / zero columns of W contribute nothing -> exact semantics.
    E_pad = ((E + 127) // 128) * 128
    R_pad = ((R + 127) // 128) * 128
    if E_pad != E:
        base2d = jnp.pad(base2d, ((0, 0), (0, E_pad - E)))
        src2d = jnp.pad(src2d, ((0, 0), (0, E_pad - E)))
        w = jnp.pad(w, ((0, E_pad - E), (0, 0)))
    if R_pad != R:
        w = jnp.pad(w, ((0, 0), (0, R_pad - R)))

    if tile_m is None:
        # Size the row tile so double-buffered (base + src + out) tiles fit a
        # conservative ~24 MiB VMEM budget.  Safe on v7x (64 MiB physical,
        # 32 MiB scoped default); big enough to sit near the HBM roofline on
        # v5e/v6e.  E=4096 f32 -> 256 rows, E=4096 bf16 -> 512 rows.
        budget_bytes = 24 * 1024 * 1024
        per_row_bytes = 3 * 2 * E_pad * dtype_bytes
        tile_m = budget_bytes // per_row_bytes
        tile_m = int(max(sub, min(1024, (tile_m // sub) * sub)))
    else:
        tile_m = int(max(sub, (tile_m // sub) * sub))
    # Never use a tile taller than the (sublane-rounded) row count.
    tile_m = min(tile_m, max(sub, ((N + sub - 1) // sub) * sub))

    grid = (pl.cdiv(N, tile_m),)

    cost = pl.CostEstimate(
        flops=4 * N * E_pad * R_pad,                            # two matmuls
        transcendentals=0,
        bytes_accessed=(3 * N * E_pad + E_pad * R_pad) * dtype_bytes)

    out = pl.pallas_call(
        _intervention_kernel,
        out_shape=jax.ShapeDtypeStruct((N, E_pad), out_dtype),
        grid_spec=pltpu.PrefetchScalarGridSpec(
            num_scalar_prefetch=0,
            grid=grid,
            in_specs=[
                pl.BlockSpec((tile_m, E_pad), lambda i: (i, 0)),   # base rows
                pl.BlockSpec((tile_m, E_pad), lambda i: (i, 0)),   # source rows
                pl.BlockSpec((E_pad, R_pad), lambda i: (0, 0)),    # W, resident
            ],
            out_specs=pl.BlockSpec((tile_m, E_pad), lambda i: (i, 0)),
        ),
        compiler_params=pltpu.CompilerParams(
            # Row axis is embarrassingly parallel -> shards across v7x's 2 TCs.
            dimension_semantics=("parallel",),
            vmem_limit_bytes=vmem_limit_bytes,
        ),
        cost_estimate=cost,
    )(base2d, src2d, w)

    if E_pad != E:
        out = out[:, :E]
    return out.reshape(orig_shape)


# TODO(synk): the `subspaces`-selected path (per-example column gather of the
# rotated diff and of W) is data-dependent indexing; only the subspaces=None
# path is implemented in-kernel here.


def _make_orthonormal_weight(key, embed_dim, low_rank_dim, dtype=jnp.float32):
    """Deterministic stand-in for torch's orthogonal parametrization: QR of a
    random Gaussian -> orthonormal columns, shape [embed_dim, low_rank_dim]."""
    a = jax.random.normal(key, (embed_dim, low_rank_dim), dtype=jnp.float32)
    q, _ = jnp.linalg.qr(a)
    return q.astype(dtype)  # [E, R], Q^T Q = I_R


if __name__ == "__main__":
    key = jax.random.PRNGKey(0)
    k_base, k_src, k_w = jax.random.split(key, 3)

    batch, seq, embed_dim, low_rank_dim = 2, 8, 32, 8

    base = jax.random.normal(k_base, (batch, seq, embed_dim), dtype=jnp.float32)
    source = jax.random.normal(k_src, (batch, seq, embed_dim), dtype=jnp.float32)
    W = _make_orthonormal_weight(k_w, embed_dim, low_rank_dim)

    # Reference (pure JAX) mirroring the PyTorch forward (subspaces=None).
    ref = base + (source - base) @ W @ W.T

    # Default tiling (single grid step at this tiny size).
    out = jax.block_until_ready(
        low_rank_rotated_space_intervention(base, source, W))
    assert out.shape == base.shape and out.dtype == base.dtype
    assert jnp.allclose(out, ref, atol=1e-5, rtol=1e-5)

    # Multi-step grid path (forces the pipelined / partial-tile code path).
    out2 = jax.block_until_ready(
        low_rank_rotated_space_intervention(base, source, W, tile_m=8))
    assert jnp.allclose(out2, ref, atol=1e-5, rtol=1e-5)

    print("KERNEL_OK")
</pallas_src>

<mosaic_0001>
module attributes {stable_mosaic.version = 11 : i64} {
  func.func @_intervention_kernel(%arg0: i32, %arg1: memref<16x128xf32, #tpu.memory_space<vmem>>, %arg2: memref<16x128xf32, #tpu.memory_space<vmem>>, %arg3: memref<128x128xf32, #tpu.memory_space<vmem>>, %arg4: memref<16x128xf32, #tpu.memory_space<vmem>>) attributes {dimension_semantics = [#tpu.dimension_semantics<parallel>], iteration_bounds = array<i64: 1>, scalar_prefetch = 0 : i64, scratch_operands = 0 : i64, tpu.core_type = #tpu.core_type<tc>, window_params = [{transform_indices = @transform_0, window_bounds = array<i64: 16, 128>}, {transform_indices = @transform_1, window_bounds = array<i64: 16, 128>}, {pipeline_mode = #tpu.pipeline_mode<synchronous>, transform_indices = @transform_2, window_bounds = array<i64: 128, 128>}, {transform_indices = @transform_3, window_bounds = array<i64: 16, 128>}]} {
    %c0 = arith.constant 0 : index
    %c0_0 = arith.constant 0 : index
    %0 = vector.load %arg1[%c0, %c0_0] : memref<16x128xf32, #tpu.memory_space<vmem>>, vector<16x128xf32>
    %c0_1 = arith.constant 0 : index
    %c0_2 = arith.constant 0 : index
    %1 = vector.load %arg2[%c0_1, %c0_2] : memref<16x128xf32, #tpu.memory_space<vmem>>, vector<16x128xf32>
    %2 = arith.subf %1, %0 : vector<16x128xf32>
    %c0_3 = arith.constant 0 : index
    %c0_4 = arith.constant 0 : index
    %3 = vector.load %arg3[%c0_3, %c0_4] : memref<128x128xf32, #tpu.memory_space<vmem>>, vector<128x128xf32>
    %cst = arith.constant dense<0.000000e+00> : vector<16x128xf32>
    %4 = tpu.matmul %2, %3, %cst {dimension_numbers = #tpu.dot_dimension_numbers<[1], [0], [0], [1], [0, 0, 1, 1], [], []>} : vector<16x128xf32>, vector<128x128xf32>, vector<16x128xf32> -> vector<16x128xf32>
    %cst_5 = arith.constant dense<0.000000e+00> : vector<16x128xf32>
    %5 = tpu.matmul %4, %3, %cst_5 {dimension_numbers = #tpu.dot_dimension_numbers<[1], [1], [0], [0], [0, 0, 1, 0], [], []>} : vector<16x128xf32>, vector<128x128xf32>, vector<16x128xf32> -> vector<16x128xf32>
    %6 = arith.addf %0, %5 : vector<16x128xf32>
    %c0_6 = arith.constant 0 : index
    %c0_7 = arith.constant 0 : index
    %7 = vector.load %arg4[%c0_6, %c0_7] : memref<16x128xf32, #tpu.memory_space<vmem>>, vector<16x128xf32>
    tpu.vector_store %arg4[%c0_6, %c0_7], %6 {strides = array<i32>} : memref<16x128xf32, #tpu.memory_space<vmem>>, vector<16x128xf32>,
    return
  }
  func.func @transform_0(%arg0: i32) -> (i32, i32) {
    %c0_i32 = arith.constant 0 : i32
    %c0_i32_0 = arith.constant 0 : i32
    return %arg0, %c0_i32 : i32, i32
  }
  func.func @transform_1(%arg0: i32) -> (i32, i32) {
    %c0_i32 = arith.constant 0 : i32
    %c0_i32_0 = arith.constant 0 : i32
    return %arg0, %c0_i32 : i32, i32
  }
  func.func @transform_2(%arg0: i32) -> (i32, i32) {
    %c0_i32 = arith.constant 0 : i32
    %c0_i32_0 = arith.constant 0 : i32
    %c0_i32_1 = arith.constant 0 : i32
    return %c0_i32, %c0_i32_0 : i32, i32
  }
  func.func @transform_3(%arg0: i32) -> (i32, i32) {
    %c0_i32 = arith.constant 0 : i32
    %c0_i32_0 = arith.constant 0 : i32
    return %arg0, %c0_i32 : i32, i32
  }
}

</mosaic_0001>

<bundles_post_ra>
// kernel: tpu_custom_call.1
= control target key start
LH: loop header
LB: loop body
LE: loop exit
PB: predicated region body
PF: predicated region fallthrough
CT: control target
= control target key end

     0   :  { %8 = vsyncpa [#allocation3], 0  ;;  %s613_s0 = inlined_call_operand.hbm [shape: f32[16,128], index: 0, kind: input, shape index: {}]   ;;  %s614_s1 = inlined_call_operand.hbm [shape: f32[16,128], index: 1, kind: input, shape index: {}]   ;;  %s615_s2 = inlined_call_operand.hbm [shape: f32[128,128], index: 2, kind: input, shape index: {}]   ;;  %s616_s3 = inlined_call_operand.hbm [shape: f32[16,128], index: 3, kind: output, shape index: {}]  }
   0x1   :  { %9 = vsyncpa [#allocation6], 0 }
   0x2   :  { %10 = vsyncpa [#allocation4], 0  ;;  %s520_s12 = smov [#allocation5]   ;;  %s521_s14 = smov [#allocation2]  }
   0x3   :  { %s28_s13 = sshll.u32 %s520_s12, 4  ;;  %s16_s15 = sshll.u32 %s521_s14, 4  ;;  %s29_s13 = int_to_ptr.vmem [resolvable:$true] %s28_s13  ;;  %s546_s15 = int_to_ptr.vmem [resolvable:$true] %s16_s15 }
   0x4   :  { %s426_s18 = scalar_lea.hbm %s614_s1, 256 }
   0x5   :  { %p427_p0 = scmp.ne.s32.totalorder %s614_s1, %s426_s18  ;;  %p430_p1 = scmp.lt.u32.totalorder %s426_s18, %s614_s1 }
   0x7   :  { %p432_p2 = pnand %p430_p1, %p427_p0 }
   0x9   :  { %435 = shalt.err (!%p432_p2)
}
   0xa   :  { %s436_s23 = scalar_lea.vmem %s29_s13, 256  ;;  %p441_p4 = scmp.lt.s32.totalorder %s29_s13, %s29_s13 }
   0xb   :  { %p437_p3 = scmp.ne.s32.totalorder %s29_s13, %s436_s23  ;;  %p442_p5 = scmp.lt.s32.totalorder %s436_s23, %s436_s23 }
   0xd   :  { %p443_p6 = por %p442_p5, %p441_p4 }
   0xf   :  { %p444_p7 = pnand %p443_p6, %p437_p3 }
  0x11   :  { %447 = shalt.err (!%p444_p7)
}
  0x12   :  { %s522_s24 = smov 128   ;;  %s523_s25 = smov 8  }
  0x13   :  { %34 = dma.hbm_to_vmem [thread:$0]  %s614_s1, 256, %s29_s13, [#allocation6], %s522_s24, %s522_s24, %s523_s25  }
  0x14   :  { %s448_s30 = scalar_lea.hbm %s613_s0, 256 }
  0x15   :  { %p449_p8 = scmp.ne.s32.totalorder %s613_s0, %s448_s30  ;;  %p452_p9 = scmp.lt.u32.totalorder %s448_s30, %s613_s0 }
  0x17   :  { %p454_p10 = pnand %p452_p9, %p449_p8 }
  0x19   :  { %457 = shalt.err (!%p454_p10)
}
  0x1a   :  { %s458_s8 = scalar_lea.vmem %s546_s15, 256  ;;  %p463_p12 = scmp.lt.s32.totalorder %s546_s15, %s546_s15 }
  0x1b   :  { %p459_p11 = scmp.ne.s32.totalorder %s546_s15, %s458_s8  ;;  %p464_p13 = scmp.lt.s32.totalorder %s458_s8, %s458_s8 }
  0x1d   :  { %p465_p0 = por %p464_p13, %p463_p12 }
  0x1f   :  { %p466_p1 = pnand %p465_p0, %p459_p11 }
  0x21   :  { %469 = shalt.err (!%p466_p1)
}
  0x22   :  { %22 = dma.hbm_to_vmem [thread:$0]  %s613_s0, 256, %s546_s15, [#allocation3], %s522_s24, %s522_s24, %s523_s25  }
  0x23   :  { %s524_s10 = smov [#allocation7]   ;;  %s470_s14 = scalar_lea.hbm %s615_s2, 2048 }
  0x24   :  { %s40_s11 = sshll.u32 %s524_s10, 4  ;;  %p471_p2 = scmp.ne.s32.totalorder %s615_s2, %s470_s14  ;;  %s41_s11 = int_to_ptr.vmem [resolvable:$true] %s40_s11 }
  0x25   :  { %p474_p3 = scmp.lt.u32.totalorder %s470_s14, %s615_s2 }
  0x27   :  { %p476_p4 = pnand %p474_p3, %p471_p2 }
  0x29   :  { %479 = shalt.err (!%p476_p4)
}
  0x2a   :  { %s480_s20 = scalar_lea.vmem %s41_s11, 2048  ;;  %p485_p6 = scmp.lt.s32.totalorder %s41_s11, %s41_s11 }
  0x2b   :  { %p481_p5 = scmp.ne.s32.totalorder %s41_s11, %s480_s20  ;;  %p486_p7 = scmp.lt.s32.totalorder %s480_s20, %s480_s20 }
  0x2d   :  { %p487_p8 = por %p486_p7, %p485_p6 }
  0x2f   :  { %p488_p9 = pnand %p487_p8, %p481_p5 }
  0x31   :  { %491 = shalt.err (!%p488_p9)
}
  0x32   :  { %46 = dma.hbm_to_vmem [thread:$0]  %s615_s2, 2048, %s41_s11, [#allocation6], %s522_s24, %s522_s24, %s523_s25  }
  0x33   :  { %514 = dma.done.wait [#allocation3], 256  }
  0x34   :  { %515 = vsyncadd [#allocation3], 4294967040 }
  0x35   :  { %516 = dma.done.wait [#allocation6], 2304  }
  0x36   :  { %517 = vsyncadd [#allocation6], 4294964992  ;;  %v62_v0 = vld [vmem:[#allocation7] sm:$0xff]  ;;  %v63_v1 = vld [vmem:[#allocation7 + $0x8] sm:$0xff]  ;;  %s525_s2 = smov [#allocation8]  }
  0x37   :  { %v64_v2 = vld [vmem:[#allocation7 + $0x10] sm:$0xff]  ;;  %v356_v3 = vpack.c.bf16 %v63_v1, %v62_v0  ;;  %v65_v4 = vld [vmem:[#allocation7 + $0x18] sm:$0xff]  ;;  %v66_v6 = vld [vmem:[#allocation7 + $0x20] sm:$0xff]  ;;  %s237_s21 = sshll.u32 %s525_s2, 4  ;;  %s238_s21 = int_to_ptr.vmem [resolvable:$true] %s237_s21 }
  0x38   :  { %v360_v5 = vpack.c.bf16 %v65_v4, %v64_v2  ;;  %v67_v7 = vld [vmem:[#allocation7 + $0x28] sm:$0xff]  ;;  %v56_v9 = vld [vmem:[#allocation2] sm:$0xff]  ;;  %v58_v10 = vld [vmem:[#allocation5] sm:$0xff]  ;;  %s492_s22 = scalar_lea.vmem %s238_s21, 256  ;;  %p497_p11 = scmp.lt.s32.totalorder %s238_s21, %s238_s21 }
  0x39   :  { %357 = vmatprep.subr.bf16.mxu0 %v356_v3  ;;  %389 = vmatprep.subr.bf16.mxu1 %v356_v3  ;;  %v364_v8 = vpack.c.bf16 %v67_v7, %v66_v6  ;;  %v68_v11 = vld [vmem:[#allocation7 + $0x30] sm:$0xff]  ;;  %v69_v12 = vld [vmem:[#allocation7 + $0x38] sm:$0xff]  ;;  %v60_v13 = vsub.f32 %v58_v10, %v56_v9  ;;  %v70_v15 = vld [vmem:[#allocation7 + $0x40] sm:$0xff]  ;;  %p493_p10 = scmp.ne.s32.totalorder %s238_s21, %s492_s22  ;;  %p498_p12 = scmp.lt.s32.totalorder %s492_s22, %s492_s22 }
  0x3a   :  { %359 = vmatpush3.bf16.msra.mxu0 %v356_v3  ;;  %391 = vmatpush3.bf16.xpose.msra.mxu1 %v356_v3  ;;  %v368_v14 = vpack.c.bf16 %v69_v12, %v68_v11  ;;  %v71_v16 = vld [vmem:[#allocation7 + $0x48] sm:$0xff]  ;;  %v72_v18 = vld [vmem:[#allocation7 + $0x50] sm:$0xff]  ;;  %v73_v19 = vld [vmem:[#allocation7 + $0x58] sm:$0xff] }
  0x3b   :  { %361 = vmatprep.subr.bf16.mxu0 %v360_v5  ;;  %393 = vmatprep.subr.bf16.mxu1 %v360_v5  ;;  %v372_v17 = vpack.c.bf16 %v71_v16, %v70_v15  ;;  %v376_v20 = vpack.c.bf16 %v73_v19, %v72_v18  ;;  %v74_v21 = vld [vmem:[#allocation7 + $0x60] sm:$0xff]  ;;  %v75_v22 = vld [vmem:[#allocation7 + $0x68] sm:$0xff]  ;;  %v76_v24 = vld [vmem:[#allocation7 + $0x70] sm:$0xff]  ;;  %p499_p13 = por %p498_p12, %p497_p11 }
  0x3c   :  { %318 = vmatprep.mubr.f32.mxu0 %v60_v13  ;;  %v380_v23 = vpack.c.bf16 %v75_v22, %v74_v21  ;;  %v77_v25 = vld [vmem:[#allocation7 + $0x78] sm:$0xff]  ;;  %v57_v27 = vld [vmem:[#allocation2 + $0x8] sm:$0xff] }
  0x3d   :  { %v384_v26 = vpack.c.bf16 %v77_v25, %v76_v24  ;;  %v59_v28 = vld [vmem:[#allocation5 + $0x8] sm:$0xff]  ;;  %p500_p0 = pnand %p499_p13, %p493_p10 }
  0x3e   :  { %363 = vmatpush3.bf16.msra.mxu0 %v360_v5  ;;  %v61_v29 = vsub.f32 %v59_v28, %v57_v27 }
  0x3f   :  { %365 = vmatprep.subr.bf16.mxu0 %v364_v8 }
  0x42   :  { %367 = vmatpush3.bf16.msra.mxu0 %v364_v8  ;;  %395 = vmatpush3.bf16.xpose.msra.mxu1 %v360_v5 }
  0x43   :  { %369 = vmatprep.subr.bf16.mxu0 %v368_v14  ;;  %397 = vmatprep.subr.bf16.mxu1 %v364_v8 }
  0x46   :  { %371 = vmatpush3.bf16.msra.mxu0 %v368_v14 }
  0x47   :  { %373 = vmatprep.subr.bf16.mxu0 %v372_v17 }
  0x4a   :  { %375 = vmatpush3.bf16.msra.mxu0 %v372_v17  ;;  %399 = vmatpush3.bf16.xpose.msra.mxu1 %v364_v8 }
  0x4b   :  { %377 = vmatprep.subr.bf16.mxu0 %v376_v20  ;;  %401 = vmatprep.subr.bf16.mxu1 %v368_v14 }
  0x4e   :  { %379 = vmatpush3.bf16.msra.mxu0 %v376_v20 }
  0x4f   :  { %381 = vmatprep.subr.bf16.mxu0 %v380_v23 }
  0x52   :  { %383 = vmatpush3.bf16.msra.mxu0 %v380_v23  ;;  %403 = vmatpush3.bf16.xpose.msra.mxu1 %v368_v14 }
  0x53   :  { %385 = vmatprep.subr.bf16.mxu0 %v384_v26  ;;  %405 = vmatprep.subr.bf16.mxu1 %v372_v17 }
  0x56   :  { %387 = vmatpush3.bf16.msra.mxu0 %v384_v26 }
  0x59   :  { %319 = vmatmul.mubr.f32.vlgmr.msra.gmra.mrb[0].mxu0 %v61_v29 }
  0x5a   :  { %407 = vmatpush3.bf16.xpose.msra.mxu1 %v372_v17 }
  0x5b   :  { %409 = vmatprep.subr.bf16.mxu1 %v376_v20 }
  0x62   :  { %411 = vmatpush3.bf16.xpose.msra.mxu1 %v376_v20 }
  0x63   :  { %413 = vmatprep.subr.bf16.mxu1 %v380_v23 }
  0x6a   :  { %415 = vmatpush3.bf16.xpose.msra.mxu1 %v380_v23 }
  0x6b   :  { %417 = vmatprep.subr.bf16.mxu1 %v384_v26 }
  0x72   :  { %419 = vmatpush3.bf16.xpose.msra.mxu1 %v384_v26 }
 0x12c   :  { %v320_v30 = vpop.f32.mrb[0].mxu0 }
 0x12d   :  { %v144_v31 = vpop.f32.mrb[1].mxu0 }
 0x12e   :  { %353 = vmatprep.mubr.f32.mxu1 %v144_v31 }
 0x12f   :  { %354 = vmatmul.mubr.f32.vlgmr.msra.gmra.mrb[0].mxu1 %v320_v30 }
 0x202   :  { %v355_v32 = vpop.f32.mrb[0].mxu1 }
 0x203   :  { %v229_v33 = vadd.f32 %v355_v32, %v57_v27  ;;  %v219_v34 = vpop.f32.mrb[1].mxu1 }
 0x204   :  { %v228_v35 = vadd.f32 %v219_v34, %v56_v9 }
 0x205   :  { %231 = vst [vmem:[#allocation8 + $0x8] sm:$0xff] %v229_v33 }
 0x206   :  { %230 = vst [vmem:[#allocation8] sm:$0xff] %v228_v35 }
 0x207   :  { %503 = shalt.err (!%p500_p0)
}
 0x208   :  { %s504_s27 = scalar_lea.hbm %s616_s3, 256 }
 0x209   :  { %p505_p1 = scmp.ne.s32.totalorder %s616_s3, %s504_s27  ;;  %p508_p2 = scmp.lt.u32.totalorder %s504_s27, %s616_s3 }
 0x20b   :  { %p510_p3 = pnand %p508_p2, %p505_p1 }
 0x20d   :  { %513 = shalt.err (!%p510_p3)
}
 0x20e   :  { %243 = dma.vmem_to_hbm [thread:$0]  %s238_s21, 256, %s616_s3, [#allocation4], %s522_s24, %s522_s24, %s523_s25  }
 0x20f   :  { %518 = dma.done.wait [#allocation4], 256  }
 0x210   :  { %519 = vsyncadd [#allocation4], 4294967040 }
 0x211   :  { %247 = vsyncpa [#allocation3], 1 }
 0x212   :  { %248 = vsyncpa [#allocation6], 1 }
 0x213   :  { %249 = vsyncpa [#allocation4], 1 }

</bundles_post_ra>
